<compile_context>
chip_gen: v7x
topology: tpu7x:2x2x1
jax: 0.10.0
libtpu: 0.0.40
codegen_flags: <defaults>
</compile_context>

<pallas_src>
import jax
import jax.numpy as jnp
from jax.experimental import pallas as pl
from jax.experimental.pallas import tpu as pltpu

_LANES = 128
_SUBLANES = 8
_MAX_TILE_ROWS = 2048   # (2048,128) f32 = 1 MiB per stream per buffer


def _num_core_splits():
    """Leading 'parallel' grid extent: 2 on dual-TensorCore chips, else 1."""
    try:
        kind = jax.devices()[0].device_kind.lower()
    except Exception:
        return 1
    if any(tag in kind for tag in ("v7", "7x", "v4", "v5p")):
        return 2
    return 1


def _round_up(x, m):
    return -(-x // m) * m


def _plan(counts, nsplit):
    """Common grid length, per-stream block_rows sized to each stream."""
    rows = [_round_up(max(_SUBLANES, -(-c // (nsplit * _LANES))), _SUBLANES)
            for c in counts]
    num_tiles = max(1, -(-max(rows) // _MAX_TILE_ROWS))
    block_rows = [_round_up(-(-r // num_tiles), _SUBLANES) for r in rows]
    padded_rows = [br * num_tiles for br in block_rows]
    return num_tiles, block_rows, padded_rows


def _moments_kernel(yp_ref, yn_ref, gp_ref, gn_ref, acc_ref):
    """Accumulate per-(sublane,lane) sum(x) and sum(x*x) for the four streams.

    acc_ref block is (1, 64, 128): stream s uses sublane rows [16s, 16s+8) for
    sum(x) and [16s+8, 16s+16) for sum(x*x).  All updates are plain vreg
    add/mul (VPU); the cross-sublane / cross-lane reduce happens in JAX.
    """
    @pl.when(pl.program_id(1) == 0)
    def _init():
        acc_ref[...] = jnp.zeros_like(acc_ref)

    for s, ref in enumerate((yp_ref, yn_ref, gp_ref, gn_ref)):
        x = ref[0]                              # (block_rows_s, 128) f32
        xg = x.reshape(-1, _SUBLANES, _LANES)   # vreg-granular grouping
        r = 16 * s
        acc_ref[0, r:r + 8, :] += jnp.sum(xg, axis=0)
        acc_ref[0, r + 8:r + 16, :] += jnp.sum(xg * xg, axis=0)


@jax.jit
def loss_con1_forward(y_pos_pred, y_neg_pred, g_pos_pred, g_neg_pred,
                      lam, alp, aa, cc, a, b):
    """Pallas implementation of loss_con1.forward; returns a scalar f32."""
    flats = [jnp.asarray(t, jnp.float32).reshape(-1)
             for t in (y_pos_pred, y_neg_pred, g_pos_pred, g_neg_pred)]
    counts = [int(t.shape[0]) for t in flats]   # static under jit

    nsplit = _num_core_splits()
    num_tiles, block_rows, padded_rows = _plan(counts, nsplit)

    # Small per-stream tail pad (to its own tile multiple only); with
    # allow_input_fusion XLA may fold this into the kernel's input DMA.
    # TODO(synk): for data-dependent / huge inputs, switch to memory_space=
    # pl.ANY + manual make_async_copy double-buffering to skip padding copies.
    def pad_split(x, pr):
        total = nsplit * pr * _LANES
        x = jnp.pad(x, (0, total - x.shape[0]))
        return x.reshape(nsplit, pr, _LANES)

    streams = [pad_split(x, pr) for x, pr in zip(flats, padded_rows)]

    in_specs = [pl.BlockSpec((1, br, _LANES), lambda c, i: (c, i, 0))
                for br in block_rows]

    total_elems = sum(nsplit * pr * _LANES for pr in padded_rows)
    cost = pl.CostEstimate(flops=3 * total_elems,
                           transcendentals=0,
                           bytes_accessed=4 * total_elems
                           + 4 * nsplit * 64 * _LANES)

    partials = pl.pallas_call(
        _moments_kernel,
        out_shape=jax.ShapeDtypeStruct((nsplit, 64, _LANES), jnp.float32),
        grid=(nsplit, num_tiles),
        in_specs=in_specs,
        out_specs=pl.BlockSpec((1, 64, _LANES), lambda c, i: (c, 0, 0)),
        compiler_params=pltpu.CompilerParams(
            dimension_semantics=("parallel", "arbitrary"),
            allow_input_fusion=[True, True, True, True]),
        cost_estimate=cost,
    )(*streams)

    # (8,) = [S_yp, S_yp2, S_yn, S_yn2, S_gp, S_gp2, S_gn, S_gn2]
    sums = jnp.sum(partials.reshape(nsplit, 8, _SUBLANES, _LANES),
                   axis=(0, 2, 3))

    a = jnp.asarray(a, jnp.float32).reshape(-1)
    b = jnp.asarray(b, jnp.float32).reshape(-1)
    alp = jnp.asarray(alp, jnp.float32).reshape(-1)
    lam = jnp.asarray(lam, jnp.float32).reshape(-1)
    aa = jnp.asarray(aa, jnp.float32)
    cc = jnp.asarray(cc, jnp.float32)

    m_yp, m_yp2 = sums[0] / counts[0], sums[1] / counts[0]
    m_yn, m_yn2 = sums[2] / counts[1], sums[3] / counts[1]
    m_gp, m_gp2 = sums[4] / counts[2], sums[5] / counts[2]
    m_gn, m_gn2 = sums[6] / counts[3], sums[7] / counts[3]

    def single(m_pos, m_pos2, m_neg, m_neg2, a_i, b_i, alpha, sign):
        # mean((x - p)^2) = mean(x^2) - 2*p*mean(x) + p^2
        t = 2.0 * (cc + alpha)
        loss = (cc * cc
                + (m_pos2 - 2.0 * a_i * m_pos + a_i * a_i)
                + (m_neg2 - 2.0 * b_i * m_neg + b_i * b_i)
                + sign * t * m_pos
                - sign * t * m_neg)
        return aa * loss

    loss1 = single(m_yp, m_yp2, m_yn, m_yn2, a[0], b[0], alp[0], -1.0)  # single_loss
    loss2 = single(m_gp, m_gp2, m_gn, m_gn2, a[1], b[1], alp[1], 1.0)   # single_cons
    loss3 = single(m_gn, m_gn2, m_gp, m_gp2, a[2], b[2], alp[2], 1.0)   # single_cons
    return lam[0] * loss1 + lam[1] * loss2 + lam[2] * loss3


def _reference(y_pos, y_neg, g_pos, g_neg, lam, alp, aa, cc, a, b):
    """Plain-JAX mirror of the PyTorch module for correctness checking."""
    def single(pos, neg, a_i, b_i, alpha, sign):
        pos = jnp.asarray(pos, jnp.float32).reshape(-1)
        neg = jnp.asarray(neg, jnp.float32).reshape(-1)
        t = 2.0 * (cc + alpha)
        l = (cc ** 2 + jnp.mean((pos - a_i) ** 2) + jnp.mean((neg - b_i) ** 2)
             + sign * t * jnp.mean(pos) - sign * t * jnp.mean(neg))
        return aa * l

    l1 = single(y_pos, y_neg, a[0, 0], b[0, 0], alp[0], -1.0)  # single_loss
    l2 = single(g_pos, g_neg, a[1, 0], b[1, 0], alp[1], 1.0)   # single_cons
    l3 = single(g_neg, g_pos, a[2, 0], b[2, 0], alp[2], 1.0)   # single_cons
    return lam[0] * l1 + lam[1] * l2 + lam[2] * l3


if __name__ == "__main__":
    key = jax.random.PRNGKey(0)
    k1, k2, k3, k4, k5, k6, k7, k8 = jax.random.split(key, 8)

    # Prediction tensors shaped as the module expects ((N, 1) columns);
    # different, non-multiple-of-128 sizes exercise padding + per-stream tiling.
    y_pos = jax.random.normal(k1, (2000, 1), jnp.float32)
    y_neg = jax.random.normal(k2, (1792, 1), jnp.float32)
    g_pos = jax.random.normal(k3, (1500, 1), jnp.float32)
    g_neg = jax.random.normal(k4, (1300, 1), jnp.float32)

    lam = jax.random.uniform(k5, (3,), jnp.float32)
    alp = jax.random.uniform(k6, (3,), jnp.float32)
    aa = jnp.float32(0.7)
    cc = jnp.float32(0.3)

    # Module parameters as in __init__: zeros of shape (3, 1).
    a0 = jnp.zeros((3, 1), jnp.float32)
    b0 = jnp.zeros((3, 1), jnp.float32)

    loss = loss_con1_forward(y_pos, y_neg, g_pos, g_neg, lam, alp, aa, cc, a0, b0)
    loss = jax.block_until_ready(loss)
    ref = _reference(y_pos, y_neg, g_pos, g_neg, lam, alp, aa, cc, a0, b0)
    assert abs(float(loss) - float(ref)) < 1e-4 * max(1.0, abs(float(ref))), \
        (float(loss), float(ref))

    # Second check with non-zero a/b (exercises the folded moment expansion).
    a1 = 0.1 * jax.random.normal(k7, (3, 1), jnp.float32)
    b1 = 0.1 * jax.random.normal(k8, (3, 1), jnp.float32)
    loss = loss_con1_forward(y_pos, y_neg, g_pos, g_neg, lam, alp, aa, cc, a1, b1)
    loss = jax.block_until_ready(loss)
    ref = _reference(y_pos, y_neg, g_pos, g_neg, lam, alp, aa, cc, a1, b1)
    assert abs(float(loss) - float(ref)) < 1e-4 * max(1.0, abs(float(ref))), \
        (float(loss), float(ref))

    print("KERNEL_OK")
</pallas_src>

<mosaic_0001>
module attributes {stable_mosaic.version = 11 : i64} {
  func.func @_moments_kernel(%arg0: i32, %arg1: i32, %arg2: memref<1x16x128xf32, #tpu.memory_space<vmem>>, %arg3: memref<1x16x128xf32, #tpu.memory_space<vmem>>, %arg4: memref<1x16x128xf32, #tpu.memory_space<vmem>>, %arg5: memref<1x16x128xf32, #tpu.memory_space<vmem>>, %arg6: memref<1x64x128xf32, #tpu.memory_space<vmem>>) attributes {dimension_semantics = [#tpu.dimension_semantics<parallel>, #tpu.dimension_semantics<arbitrary>], iteration_bounds = array<i64: 1, 1>, scalar_prefetch = 0 : i64, scratch_operands = 0 : i64, tpu.core_type = #tpu.core_type<tc>, window_params = [{transform_indices = @transform_0, window_bounds = array<i64: 1, 16, 128>}, {transform_indices = @transform_1, window_bounds = array<i64: 1, 16, 128>}, {transform_indices = @transform_2, window_bounds = array<i64: 1, 16, 128>}, {transform_indices = @transform_3, window_bounds = array<i64: 1, 16, 128>}, {transform_indices = @transform_4, window_bounds = array<i64: 1, 64, 128>}]} {
    %c0_i32 = arith.constant 0 : i32
    %0 = arith.cmpi eq, %arg1, %c0_i32 : i32
    %1 = arith.extui %0 : i1 to i32
    %c0_i32_0 = arith.constant 0 : i32
    %2 = arith.cmpi ne, %1, %c0_i32_0 : i32
    scf.if %2 {
      %cst_60 = arith.constant 0.000000e+00 : f32
      %75 = vector.broadcast %cst_60 : f32 to vector<1x64x128xf32>
      %c0_61 = arith.constant 0 : index
      %c0_62 = arith.constant 0 : index
      %c0_63 = arith.constant 0 : index
      %76 = vector.load %arg6[%c0_61, %c0_62, %c0_63] : memref<1x64x128xf32, #tpu.memory_space<vmem>>, vector<1x64x128xf32>
      tpu.vector_store %arg6[%c0_61, %c0_62, %c0_63], %75 {strides = array<i32>} : memref<1x64x128xf32, #tpu.memory_space<vmem>>, vector<1x64x128xf32>,
    } else {
    }
    %c0 = arith.constant 0 : index
    %c0_1 = arith.constant 0 : index
    %c0_2 = arith.constant 0 : index
    %3 = vector.load %arg2[%c0, %c0_1, %c0_2] : memref<1x16x128xf32, #tpu.memory_space<vmem>>, vector<1x16x128xf32>
    %4 = vector.shape_cast %3 : vector<1x16x128xf32> to vector<16x128xf32>
    %5 = vector.shape_cast %4 : vector<16x128xf32> to vector<2x8x128xf32>
    %c0_3 = arith.constant 0 : index
    %c0_4 = arith.constant 0 : index
    %c0_5 = arith.constant 0 : index
    %6 = vector.load %arg6[%c0_3, %c0_4, %c0_5] : memref<1x64x128xf32, #tpu.memory_space<vmem>>, vector<1x8x128xf32>
    %7 = vector.shape_cast %6 : vector<1x8x128xf32> to vector<8x128xf32>
    %cst = arith.constant dense<0.000000e+00> : vector<8x128xf32>
    %8 = vector.multi_reduction <add>, %5, %cst [0] : vector<2x8x128xf32> to vector<8x128xf32>
    %9 = arith.addf %7, %8 : vector<8x128xf32>
    %c0_6 = arith.constant 0 : index
    %c0_7 = arith.constant 0 : index
    %c0_8 = arith.constant 0 : index
    %10 = vector.load %arg6[%c0_6, %c0_7, %c0_8] : memref<1x64x128xf32, #tpu.memory_space<vmem>>, vector<1x8x128xf32>
    %11 = vector.shape_cast %10 : vector<1x8x128xf32> to vector<8x128xf32>
    %12 = vector.shape_cast %9 : vector<8x128xf32> to vector<1x8x128xf32>
    tpu.vector_store %arg6[%c0_6, %c0_7, %c0_8], %12 {strides = array<i32>} : memref<1x64x128xf32, #tpu.memory_space<vmem>>, vector<1x8x128xf32>,
    %c0_9 = arith.constant 0 : index
    %c8 = arith.constant 8 : index
    %c0_10 = arith.constant 0 : index
    %13 = vector.load %arg6[%c0_9, %c8, %c0_10] : memref<1x64x128xf32, #tpu.memory_space<vmem>>, vector<1x8x128xf32>
    %14 = vector.shape_cast %13 : vector<1x8x128xf32> to vector<8x128xf32>
    %15 = arith.mulf %5, %5 : vector<2x8x128xf32>
    %cst_11 = arith.constant dense<0.000000e+00> : vector<8x128xf32>
    %16 = vector.multi_reduction <add>, %15, %cst_11 [0] : vector<2x8x128xf32> to vector<8x128xf32>
    %17 = arith.addf %14, %16 : vector<8x128xf32>
    %c0_12 = arith.constant 0 : index
    %c8_13 = arith.constant 8 : index
    %c0_14 = arith.constant 0 : index
    %18 = vector.load %arg6[%c0_12, %c8_13, %c0_14] : memref<1x64x128xf32, #tpu.memory_space<vmem>>, vector<1x8x128xf32>
    %19 = vector.shape_cast %18 : vector<1x8x128xf32> to vector<8x128xf32>
    %20 = vector.shape_cast %17 : vector<8x128xf32> to vector<1x8x128xf32>
    tpu.vector_store %arg6[%c0_12, %c8_13, %c0_14], %20 {strides = array<i32>} : memref<1x64x128xf32, #tpu.memory_space<vmem>>, vector<1x8x128xf32>,
    %c0_15 = arith.constant 0 : index
    %c0_16 = arith.constant 0 : index
    %c0_17 = arith.constant 0 : index
    %21 = vector.load %arg3[%c0_15, %c0_16, %c0_17] : memref<1x16x128xf32, #tpu.memory_space<vmem>>, vector<1x16x128xf32>
    %22 = vector.shape_cast %21 : vector<1x16x128xf32> to vector<16x128xf32>
    %23 = vector.shape_cast %22 : vector<16x128xf32> to vector<2x8x128xf32>
    %c0_18 = arith.constant 0 : index
    %c16 = arith.constant 16 : index
    %c0_19 = arith.constant 0 : index
    %24 = vector.load %arg6[%c0_18, %c16, %c0_19] : memref<1x64x128xf32, #tpu.memory_space<vmem>>, vector<1x8x128xf32>
    %25 = vector.shape_cast %24 : vector<1x8x128xf32> to vector<8x128xf32>
    %cst_20 = arith.constant dense<0.000000e+00> : vector<8x128xf32>
    %26 = vector.multi_reduction <add>, %23, %cst_20 [0] : vector<2x8x128xf32> to vector<8x128xf32>
    %27 = arith.addf %25, %26 : vector<8x128xf32>
    %c0_21 = arith.constant 0 : index
    %c16_22 = arith.constant 16 : index
    %c0_23 = arith.constant 0 : index
    %28 = vector.load %arg6[%c0_21, %c16_22, %c0_23] : memref<1x64x128xf32, #tpu.memory_space<vmem>>, vector<1x8x128xf32>
    %29 = vector.shape_cast %28 : vector<1x8x128xf32> to vector<8x128xf32>
    %30 = vector.shape_cast %27 : vector<8x128xf32> to vector<1x8x128xf32>
    tpu.vector_store %arg6[%c0_21, %c16_22, %c0_23], %30 {strides = array<i32>} : memref<1x64x128xf32, #tpu.memory_space<vmem>>, vector<1x8x128xf32>,
    %c0_24 = arith.constant 0 : index
    %c24 = arith.constant 24 : index
    %c0_25 = arith.constant 0 : index
    %31 = vector.load %arg6[%c0_24, %c24, %c0_25] : memref<1x64x128xf32, #tpu.memory_space<vmem>>, vector<1x8x128xf32>
    %32 = vector.shape_cast %31 : vector<1x8x128xf32> to vector<8x128xf32>
    %33 = arith.mulf %23, %23 : vector<2x8x128xf32>
    %cst_26 = arith.constant dense<0.000000e+00> : vector<8x128xf32>
    %34 = vector.multi_reduction <add>, %33, %cst_26 [0] : vector<2x8x128xf32> to vector<8x128xf32>
    %35 = arith.addf %32, %34 : vector<8x128xf32>
    %c0_27 = arith.constant 0 : index
    %c24_28 = arith.constant 24 : index
    %c0_29 = arith.constant 0 : index
    %36 = vector.load %arg6[%c0_27, %c24_28, %c0_29] : memref<1x64x128xf32, #tpu.memory_space<vmem>>, vector<1x8x128xf32>
    %37 = vector.shape_cast %36 : vector<1x8x128xf32> to vector<8x128xf32>
    %38 = vector.shape_cast %35 : vector<8x128xf32> to vector<1x8x128xf32>
    tpu.vector_store %arg6[%c0_27, %c24_28, %c0_29], %38 {strides = array<i32>} : memref<1x64x128xf32, #tpu.memory_space<vmem>>, vector<1x8x128xf32>,
    %c0_30 = arith.constant 0 : index
    %c0_31 = arith.constant 0 : index
    %c0_32 = arith.constant 0 : index
    %39 = vector.load %arg4[%c0_30, %c0_31, %c0_32] : memref<1x16x128xf32, #tpu.memory_space<vmem>>, vector<1x16x128xf32>
    %40 = vector.shape_cast %39 : vector<1x16x128xf32> to vector<16x128xf32>
    %41 = vector.shape_cast %40 : vector<16x128xf32> to vector<2x8x128xf32>
    %c0_33 = arith.constant 0 : index
    %c32 = arith.constant 32 : index
    %c0_34 = arith.constant 0 : index
    %42 = vector.load %arg6[%c0_33, %c32, %c0_34] : memref<1x64x128xf32, #tpu.memory_space<vmem>>, vector<1x8x128xf32>
    %43 = vector.shape_cast %42 : vector<1x8x128xf32> to vector<8x128xf32>
    %cst_35 = arith.constant dense<0.000000e+00> : vector<8x128xf32>
    %44 = vector.multi_reduction <add>, %41, %cst_35 [0] : vector<2x8x128xf32> to vector<8x128xf32>
    %45 = arith.addf %43, %44 : vector<8x128xf32>
    %c0_36 = arith.constant 0 : index
    %c32_37 = arith.constant 32 : index
    %c0_38 = arith.constant 0 : index
    %46 = vector.load %arg6[%c0_36, %c32_37, %c0_38] : memref<1x64x128xf32, #tpu.memory_space<vmem>>, vector<1x8x128xf32>
    %47 = vector.shape_cast %46 : vector<1x8x128xf32> to vector<8x128xf32>
    %48 = vector.shape_cast %45 : vector<8x128xf32> to vector<1x8x128xf32>
    tpu.vector_store %arg6[%c0_36, %c32_37, %c0_38], %48 {strides = array<i32>} : memref<1x64x128xf32, #tpu.memory_space<vmem>>, vector<1x8x128xf32>,
    %c0_39 = arith.constant 0 : index
    %c40 = arith.constant 40 : index
    %c0_40 = arith.constant 0 : index
    %49 = vector.load %arg6[%c0_39, %c40, %c0_40] : memref<1x64x128xf32, #tpu.memory_space<vmem>>, vector<1x8x128xf32>
    %50 = vector.shape_cast %49 : vector<1x8x128xf32> to vector<8x128xf32>
    %51 = arith.mulf %41, %41 : vector<2x8x128xf32>
    %cst_41 = arith.constant dense<0.000000e+00> : vector<8x128xf32>
    %52 = vector.multi_reduction <add>, %51, %cst_41 [0] : vector<2x8x128xf32> to vector<8x128xf32>
    %53 = arith.addf %50, %52 : vector<8x128xf32>
    %c0_42 = arith.constant 0 : index
    %c40_43 = arith.constant 40 : index
    %c0_44 = arith.constant 0 : index
    %54 = vector.load %arg6[%c0_42, %c40_43, %c0_44] : memref<1x64x128xf32, #tpu.memory_space<vmem>>, vector<1x8x128xf32>
    %55 = vector.shape_cast %54 : vector<1x8x128xf32> to vector<8x128xf32>
    %56 = vector.shape_cast %53 : vector<8x128xf32> to vector<1x8x128xf32>
    tpu.vector_store %arg6[%c0_42, %c40_43, %c0_44], %56 {strides = array<i32>} : memref<1x64x128xf32, #tpu.memory_space<vmem>>, vector<1x8x128xf32>,
    %c0_45 = arith.constant 0 : index
    %c0_46 = arith.constant 0 : index
    %c0_47 = arith.constant 0 : index
    %57 = vector.load %arg5[%c0_45, %c0_46, %c0_47] : memref<1x16x128xf32, #tpu.memory_space<vmem>>, vector<1x16x128xf32>
    %58 = vector.shape_cast %57 : vector<1x16x128xf32> to vector<16x128xf32>
    %59 = vector.shape_cast %58 : vector<16x128xf32> to vector<2x8x128xf32>
    %c0_48 = arith.constant 0 : index
    %c48 = arith.constant 48 : index
    %c0_49 = arith.constant 0 : index
    %60 = vector.load %arg6[%c0_48, %c48, %c0_49] : memref<1x64x128xf32, #tpu.memory_space<vmem>>, vector<1x8x128xf32>
    %61 = vector.shape_cast %60 : vector<1x8x128xf32> to vector<8x128xf32>
    %cst_50 = arith.constant dense<0.000000e+00> : vector<8x128xf32>
    %62 = vector.multi_reduction <add>, %59, %cst_50 [0] : vector<2x8x128xf32> to vector<8x128xf32>
    %63 = arith.addf %61, %62 : vector<8x128xf32>
    %c0_51 = arith.constant 0 : index
    %c48_52 = arith.constant 48 : index
    %c0_53 = arith.constant 0 : index
    %64 = vector.load %arg6[%c0_51, %c48_52, %c0_53] : memref<1x64x128xf32, #tpu.memory_space<vmem>>, vector<1x8x128xf32>
    %65 = vector.shape_cast %64 : vector<1x8x128xf32> to vector<8x128xf32>
    %66 = vector.shape_cast %63 : vector<8x128xf32> to vector<1x8x128xf32>
    tpu.vector_store %arg6[%c0_51, %c48_52, %c0_53], %66 {strides = array<i32>} : memref<1x64x128xf32, #tpu.memory_space<vmem>>, vector<1x8x128xf32>,
    %c0_54 = arith.constant 0 : index
    %c56 = arith.constant 56 : index
    %c0_55 = arith.constant 0 : index
    %67 = vector.load %arg6[%c0_54, %c56, %c0_55] : memref<1x64x128xf32, #tpu.memory_space<vmem>>, vector<1x8x128xf32>
    %68 = vector.shape_cast %67 : vector<1x8x128xf32> to vector<8x128xf32>
    %69 = arith.mulf %59, %59 : vector<2x8x128xf32>
    %cst_56 = arith.constant dense<0.000000e+00> : vector<8x128xf32>
    %70 = vector.multi_reduction <add>, %69, %cst_56 [0] : vector<2x8x128xf32> to vector<8x128xf32>
    %71 = arith.addf %68, %70 : vector<8x128xf32>
    %c0_57 = arith.constant 0 : index
    %c56_58 = arith.constant 56 : index
    %c0_59 = arith.constant 0 : index
    %72 = vector.load %arg6[%c0_57, %c56_58, %c0_59] : memref<1x64x128xf32, #tpu.memory_space<vmem>>, vector<1x8x128xf32>
    %73 = vector.shape_cast %72 : vector<1x8x128xf32> to vector<8x128xf32>
    %74 = vector.shape_cast %71 : vector<8x128xf32> to vector<1x8x128xf32>
    tpu.vector_store %arg6[%c0_57, %c56_58, %c0_59], %74 {strides = array<i32>} : memref<1x64x128xf32, #tpu.memory_space<vmem>>, vector<1x8x128xf32>,
    return
  }
  func.func @transform_0(%arg0: i32, %arg1: i32) -> (i32, i32, i32) {
    %c0_i32 = arith.constant 0 : i32
    %c0_i32_0 = arith.constant 0 : i32
    return %arg0, %arg1, %c0_i32 : i32, i32, i32
  }
  func.func @transform_1(%arg0: i32, %arg1: i32) -> (i32, i32, i32) {
    %c0_i32 = arith.constant 0 : i32
    %c0_i32_0 = arith.constant 0 : i32
    return %arg0, %arg1, %c0_i32 : i32, i32, i32
  }
  func.func @transform_2(%arg0: i32, %arg1: i32) -> (i32, i32, i32) {
    %c0_i32 = arith.constant 0 : i32
    %c0_i32_0 = arith.constant 0 : i32
    return %arg0, %arg1, %c0_i32 : i32, i32, i32
  }
  func.func @transform_3(%arg0: i32, %arg1: i32) -> (i32, i32, i32) {
    %c0_i32 = arith.constant 0 : i32
    %c0_i32_0 = arith.constant 0 : i32
    return %arg0, %arg1, %c0_i32 : i32, i32, i32
  }
  func.func @transform_4(%arg0: i32, %arg1: i32) -> (i32, i32, i32) {
    %c0_i32 = arith.constant 0 : i32
    %c0_i32_0 = arith.constant 0 : i32
    %c0_i32_1 = arith.constant 0 : i32
    return %arg0, %c0_i32, %c0_i32_0 : i32, i32, i32
  }
}

</mosaic_0001>

<bundles_post_ra>
// kernel: loss_con1_forward.2
= control target key start
LH: loop header
LB: loop body
LE: loop exit
PB: predicated region body
PF: predicated region fallthrough
CT: control target
= control target key end

     0   :  { %v31_v2 = vlaneseq  ;;  %s236_s0 = inlined_call_operand.vmem [shape: f32[1300], index: 0, kind: input, shape index: {}]   ;;  %s237_s1 = inlined_call_operand.<no memory space> [shape: f32[], index: 1, kind: input, shape index: {}]   ;;  %s238_s2 = inlined_call_operand.vmem [shape: f32[1500], index: 2, kind: input, shape index: {}]   ;;  %s239_s3 = inlined_call_operand.vmem [shape: f32[1792], index: 3, kind: input, shape index: {}]   ;;  %s240_s4 = inlined_call_operand.vmem [shape: f32[2000], index: 4, kind: input, shape index: {}]   ;;  %s241_s5 = inlined_call_operand.vmem [shape: f32[1,64,128], index: 5, kind: output, shape index: {}]  }
   0x1   :  { %v10_v0 = vstv %s237_s1  ;;  %v22_v1 = vld [vmem:[%s240_s4] sm:$0xff]  ;;  %v150_v4 = vld [vmem:[%s240_s4 + $0x8] sm:$0xff] }
   0x2   :  { %v38_v3 = vld [vmem:[%s239_s3] sm:$0xff]  ;;  %v151_v5 = vld [vmem:[%s239_s3 + $0x8] sm:$0xff]  ;;  %v32_v7 = vadd.s32 1024, %v31_v2  ;;  %v105_v11 = vmul.f32 %v22_v1, %v22_v1 }
   0x3   :  { %v54_v6 = vld [vmem:[%s238_s2] sm:$0xff]  ;;  %v152_v8 = vld [vmem:[%s238_s2 + $0x8] sm:$0xff]  ;;  %v117_v12 = vmul.f32 %v38_v3, %v38_v3 }
   0x4   :  { %v70_v9 = vld [vmem:[%s236_s0] sm:$0xff]  ;;  %v153_v10 = vld [vmem:[%s236_s0 + $0x8] sm:$0xff]  ;;  %v129_v13 = vmul.f32 %v54_v6, %v54_v6  ;;  %vm33_vm0 = vcmp.lt.s32.totalorder %v32_v7, 2000  ;;  %vm49_vm1 = vcmp.lt.s32.totalorder %v32_v7, 1792  ;;  %vm65_vm2 = vcmp.lt.s32.totalorder %v32_v7, 1500 }
   0x5   :  { %v141_v14 = vmul.f32 %v70_v9, %v70_v9  ;;  %vm81_vm3 = vcmp.lt.s32.totalorder %v32_v7, 1300  ;;  %v34_v15 = vsel %vm33_vm0, %v150_v4, %v10_v0  ;;  %v50_v16 = vsel %vm49_vm1, %v151_v5, %v10_v0 }
   0x6   :  { %v66_v17 = vsel %vm65_vm2, %v152_v8, %v10_v0  ;;  %v82_v18 = vsel %vm81_vm3, %v153_v10, %v10_v0  ;;  %v101_v19 = vadd.f32 %v34_v15, %v22_v1  ;;  %v106_v20 = vmul.f32 %v34_v15, %v34_v15 }
   0x7   :  { %v113_v21 = vadd.f32 %v50_v16, %v38_v3  ;;  %v118_v22 = vmul.f32 %v50_v16, %v50_v16  ;;  %v125_v23 = vadd.f32 %v66_v17, %v54_v6  ;;  %v130_v24 = vmul.f32 %v66_v17, %v66_v17 }
   0x8   :  { %v137_v25 = vadd.f32 %v82_v18, %v70_v9  ;;  %v142_v26 = vmul.f32 %v82_v18, %v82_v18  ;;  %v107_v27 = vadd.f32 %v106_v20, %v105_v11  ;;  %103 = vst [vmem:[%s241_s5] sm:$0xff] %v101_v19 }
   0x9   :  { %v119_v28 = vadd.f32 %v118_v22, %v117_v12  ;;  %v131_v29 = vadd.f32 %v130_v24, %v129_v13  ;;  %115 = vst [vmem:[%s241_s5 + $0x10] sm:$0xff] %v113_v21  ;;  %127 = vst [vmem:[%s241_s5 + $0x20] sm:$0xff] %v125_v23 }
   0xa   :  { %v143_v30 = vadd.f32 %v142_v26, %v141_v14  ;;  %139 = vst [vmem:[%s241_s5 + $0x30] sm:$0xff] %v137_v25  ;;  %109 = vst [vmem:[%s241_s5 + $0x8] sm:$0xff] %v107_v27 }
   0xb   :  { %121 = vst [vmem:[%s241_s5 + $0x18] sm:$0xff] %v119_v28  ;;  %133 = vst [vmem:[%s241_s5 + $0x28] sm:$0xff] %v131_v29 }
   0xc   :  { %145 = vst [vmem:[%s241_s5 + $0x38] sm:$0xff] %v143_v30 }

</bundles_post_ra>
